<compile_context>
chip_gen: v7x
topology: tpu7x:2x2x1
jax: 0.10.0
libtpu: 0.0.40
codegen_flags: <defaults>
</compile_context>

<pallas_src>
from functools import partial

import jax
import jax.numpy as jnp
from jax import lax
from jax.experimental import pallas as pl
from jax.experimental.pallas import tpu as pltpu

LANE = 128                    # lane (fast) axis of the slab
MAX_BLOCK_BYTES = 1 << 20     # 1 MiB per input block (2048 f32 rows)
SMALL_BYTES = 128 << 10       # below this per stream: one full-array block
VMEM_LIMIT = 32 << 20         # explicit scoped-VMEM budget (fits all gens)


def _round_up(x, m):
    return -(-x // m) * m


def _num_tensorcores():
    """2 on megacore parts (v7x / v5p / v4), 1 on v5e / v6e / unknown."""
    try:
        kind = jax.devices()[0].device_kind.lower()
    except Exception:
        return 1
    if "lite" in kind or "v5e" in kind or "v6e" in kind:
        return 1
    if "v7" in kind or "v5p" in kind or "v4" in kind:
        return 2
    return 1


_NCORES = _num_tensorcores()


def _to_slab(x, rows):
    """View x as a (rows, LANE) slab.  Free (bitcast reshape) when
    numel % LANE == 0; otherwise a small zero-pad copy is unavoidable."""
    flat = x.reshape(-1)
    pad = rows * LANE - flat.shape[0]
    if pad:
        # TODO(synk): only reached when numel % 128 != 0; this is the one
        # remaining extra HBM pass (handling the lane-ragged tail fully
        # in-kernel would need a 1-D masked layout).
        flat = jnp.pad(flat, (0, pad))
    return flat.reshape(rows, LANE)


def _geometry(n, itemsizes, ncores):
    """Return (rows, block_rows, chunks) for an n-element problem."""
    rows = max(1, -(-n // LANE))
    item_max = max(itemsizes)
    if rows * LANE * item_max <= SMALL_BYTES:
        # Tiny input: a single full-array block (always a legal block shape).
        return rows, rows, 1
    sub = max(8, 32 // min(itemsizes))          # min sublane tile for dtype
    max_br = max(sub, ((MAX_BLOCK_BYTES // (LANE * item_max)) // sub) * sub)
    min_chunks = max(4, 2 * ncores)             # pipelining + megacore sharding
    block_rows = max(sub, min(max_br, _round_up(-(-rows // min_chunks), sub)))
    chunks = -(-rows // block_rows)
    return rows, block_rows, chunks


# ---------------------------------------------------------------------------
# Sum-reduction kernel: per-core (1, 1, 128) resident partial sums.
# ---------------------------------------------------------------------------
def _sum_call(slabs, rows, block_rows, chunks, ncores):
    weighted = len(slabs) == 3
    ncores = max(1, min(ncores, chunks))
    cpc = -(-chunks // ncores)                  # chunks per core
    needs_guard = cpc * ncores != chunks        # last core has overflow steps
    ragged = rows % block_rows != 0             # boundary block needs masking

    def kernel(*refs):
        o_ref = refs[-1]
        k = pl.program_id(1)

        @pl.when(k == 0)
        def _init():
            o_ref[...] = jnp.zeros_like(o_ref)

        gi = pl.program_id(0) * cpc + k         # global chunk index

        def _accum():
            d = jnp.abs(refs[0][...].astype(jnp.float32)
                        - refs[1][...].astype(jnp.float32))
            if weighted:
                d = d * refs[2][...].astype(jnp.float32)
            if ragged:
                row = gi * block_rows + lax.broadcasted_iota(
                    jnp.int32, (block_rows, LANE), 0)
                d = jnp.where(row < rows, d, 0.0)
            # Sublane reduce to (1, LANE): cheap VPU/XLU filler on a
            # memory-bound kernel; keeps the output writeback tiny.
            o_ref[...] += d.sum(axis=0, keepdims=True)[None]

        if needs_guard:
            pl.when(gi < chunks)(_accum)
        else:
            _accum()

    if needs_guard:
        def in_map(c, k):
            return (jnp.minimum(c * cpc + k, chunks - 1), 0)
    else:
        def in_map(c, k):
            return (c * cpc + k, 0)

    in_spec = pl.BlockSpec((block_rows, LANE), in_map)
    partial_sums = pl.pallas_call(
        kernel,
        out_shape=jax.ShapeDtypeStruct((ncores, 1, LANE), jnp.float32),
        grid=(ncores, cpc),
        in_specs=[in_spec] * len(slabs),
        out_specs=pl.BlockSpec((1, 1, LANE), lambda c, k: (c, 0, 0)),
        compiler_params=pltpu.CompilerParams(
            dimension_semantics=("parallel", "arbitrary"),
            vmem_limit_bytes=VMEM_LIMIT),
    )(*slabs)
    # Final reduce over ncores*128 floats only — negligible.
    return jnp.sum(partial_sums)


# ---------------------------------------------------------------------------
# Elementwise ('none') kernel: loss_weight folded in as a compile-time scalar.
# ---------------------------------------------------------------------------
def _none_call(slabs, rows, block_rows, chunks, out_dtype, scale):
    weighted = len(slabs) == 3

    def kernel(*refs):
        o_ref = refs[-1]
        d = jnp.abs(refs[0][...].astype(jnp.float32)
                    - refs[1][...].astype(jnp.float32))
        if weighted:
            d = d * refs[2][...].astype(jnp.float32)
        if scale != 1.0:
            d = d * jnp.float32(scale)
        o_ref[...] = d.astype(o_ref.dtype)

    spec = pl.BlockSpec((block_rows, LANE), lambda i: (i, 0))
    return pl.pallas_call(
        kernel,
        out_shape=jax.ShapeDtypeStruct((rows, LANE), out_dtype),
        grid=(chunks,),
        in_specs=[spec] * len(slabs),
        out_specs=spec,
        compiler_params=pltpu.CompilerParams(
            dimension_semantics=("parallel",),
            vmem_limit_bytes=VMEM_LIMIT),
    )(*slabs)


# ---------------------------------------------------------------------------
# jitted wrappers
# ---------------------------------------------------------------------------
@jax.jit
def _l1_sum(pred, target, weight):
    itemsizes = [pred.dtype.itemsize, target.dtype.itemsize]
    if weight is not None:
        itemsizes.append(weight.dtype.itemsize)
    rows, block_rows, chunks = _geometry(pred.size, itemsizes, _NCORES)
    slabs = [_to_slab(pred, rows), _to_slab(target, rows)]
    if weight is not None:
        slabs.append(_to_slab(weight, rows))
    return _sum_call(slabs, rows, block_rows, chunks, _NCORES)


@partial(jax.jit, static_argnames=("scale",))
def _l1_none(pred, target, weight, *, scale):
    n = pred.size
    itemsizes = [pred.dtype.itemsize, target.dtype.itemsize]
    if weight is not None:
        itemsizes.append(weight.dtype.itemsize)
    rows, block_rows, chunks = _geometry(n, itemsizes, _NCORES)
    slabs = [_to_slab(pred, rows), _to_slab(target, rows)]
    if weight is not None:
        slabs.append(_to_slab(weight, rows))
    out = _none_call(slabs, rows, block_rows, chunks, pred.dtype, scale)
    flat = out.reshape(-1)
    if flat.shape[0] != n:
        # TODO(synk): only when numel % 128 != 0 — one extra output copy.
        flat = flat[:n]
    return flat.reshape(pred.shape)


# ---------------------------------------------------------------------------
# Module equivalent
# ---------------------------------------------------------------------------
class L1Loss:
    """JAX/Pallas equivalent of the PyTorch L1Loss (mmdet weighted_loss)."""

    def __init__(self, reduction: str = "mean", loss_weight: float = 1.0):
        assert reduction in ("none", "mean", "sum")
        self.reduction = reduction
        self.loss_weight = loss_weight

    def __call__(self, pred, target, weight=None, avg_factor=None,
                 reduction_override=None):
        pred = jnp.asarray(pred)
        target = jnp.asarray(target)

        if weight is not None:
            weight = jnp.asarray(weight)
            # mmdet cold branch: all weights non-positive -> (pred*weight).sum()
            # NOTE: this eager check forces a device read; under jit tracing it
            # cannot be evaluated and is skipped.
            try:
                all_nonpos = not bool(jnp.any(weight > 0))
            except jax.errors.ConcretizationTypeError:
                # TODO(synk): data-dependent, shape-changing branch is not
                # representable under jit with a traced weight.
                all_nonpos = False
            if all_nonpos:
                w = weight
                if pred.ndim == w.ndim + 1:
                    w = jnp.expand_dims(w, 1)
                return jnp.sum(pred * w)

        assert reduction_override in (None, "none", "mean", "sum")
        reduction = reduction_override if reduction_override else self.reduction

        # target.numel() == 0 -> pred.sum() * 0
        if target.size == 0:
            return jnp.sum(pred) * 0

        assert pred.shape == target.shape

        if weight is not None and weight.shape != pred.shape:
            # TODO(synk): a smaller weight is materialised here; an in-kernel
            # stride-0 / repeated-block broadcast would avoid this extra pass.
            weight = jnp.broadcast_to(weight, pred.shape)

        lw = float(self.loss_weight)
        if reduction == "none":
            # loss_weight folded into the kernel (no extra XLA pass).
            return _l1_none(pred, target, weight, scale=lw)

        s = _l1_sum(pred, target, weight)
        if reduction == "mean":
            denom = avg_factor if avg_factor is not None else pred.size
            return lw * s / denom
        # 'sum' (mmdet errors on avg_factor with 'sum'; ignored here)
        return lw * s


# ---------------------------------------------------------------------------
if __name__ == "__main__":
    key = jax.random.PRNGKey(0)
    k1, k2, k3, k4, k5, k6, k7, k8 = jax.random.split(key, 8)

    # NCHW-shaped synthetic inputs (batch=2, channels=4, spatial=16x16)
    pred = jax.random.normal(k1, (2, 4, 16, 16), dtype=jnp.float32)
    target = jax.random.normal(k2, (2, 4, 16, 16), dtype=jnp.float32)
    weight = (jax.random.uniform(k3, (2, 4, 16, 16), dtype=jnp.float32) > 0.3
              ).astype(jnp.float32)

    loss_mod = L1Loss(reduction="mean", loss_weight=2.0)

    # mean reduction (default, no weight -> 2-stream kernel)
    out_mean = jax.block_until_ready(loss_mod(pred, target))
    ref_mean = 2.0 * jnp.mean(jnp.abs(pred - target))
    assert jnp.allclose(out_mean, ref_mean, rtol=1e-5, atol=1e-5)

    # weighted mean with avg_factor
    out_w = jax.block_until_ready(
        loss_mod(pred, target, weight=weight, avg_factor=123))
    ref_w = 2.0 * jnp.sum(jnp.abs(pred - target) * weight) / 123
    assert jnp.allclose(out_w, ref_w, rtol=1e-5, atol=1e-5)

    # sum reduction override
    out_sum = jax.block_until_ready(
        loss_mod(pred, target, reduction_override="sum"))
    ref_sum = 2.0 * jnp.sum(jnp.abs(pred - target))
    assert jnp.allclose(out_sum, ref_sum, rtol=1e-4, atol=1e-3)

    # none reduction override (elementwise kernel, weighted, loss_weight folded)
    out_none = jax.block_until_ready(
        loss_mod(pred, target, weight=weight, reduction_override="none"))
    ref_none = 2.0 * jnp.abs(pred - target) * weight
    assert out_none.shape == pred.shape
    assert jnp.allclose(out_none, ref_none, rtol=1e-5, atol=1e-5)

    # none reduction, no weight
    out_none_nw = jax.block_until_ready(
        loss_mod(pred, target, reduction_override="none"))
    assert jnp.allclose(out_none_nw, 2.0 * jnp.abs(pred - target),
                        rtol=1e-5, atol=1e-5)

    # Multi-chunk, 128-aligned but block-ragged shape: exercises the copy-free
    # path with in-kernel boundary-block masking (sum) / dropped writes (none).
    pred2 = jax.random.normal(k4, (345, 128), dtype=jnp.float32)
    target2 = jax.random.normal(k5, (345, 128), dtype=jnp.float32)
    weight2 = (jax.random.uniform(k6, (345, 128), dtype=jnp.float32) > 0.5
               ).astype(jnp.float32)
    mod2 = L1Loss(reduction="sum", loss_weight=1.0)
    out2 = jax.block_until_ready(mod2(pred2, target2, weight=weight2))
    ref2 = jnp.sum(jnp.abs(pred2 - target2) * weight2)
    assert jnp.allclose(out2, ref2, rtol=1e-4, atol=1e-2)
    out2n = jax.block_until_ready(mod2(pred2, target2,
                                       reduction_override="none"))
    assert out2n.shape == pred2.shape
    assert jnp.allclose(out2n, jnp.abs(pred2 - target2), rtol=1e-6, atol=1e-6)

    # Lane-ragged shape (numel % 128 != 0): small pad fallback path.
    pred3 = jax.random.normal(k7, (37, 5), dtype=jnp.float32)
    target3 = jax.random.normal(k8, (37, 5), dtype=jnp.float32)
    out3 = jax.block_until_ready(mod2(pred3, target3))
    assert jnp.allclose(out3, jnp.sum(jnp.abs(pred3 - target3)),
                        rtol=1e-5, atol=1e-4)
    out3n = jax.block_until_ready(mod2(pred3, target3,
                                       reduction_override="none"))
    assert out3n.shape == pred3.shape
    assert jnp.allclose(out3n, jnp.abs(pred3 - target3), rtol=1e-6, atol=1e-6)

    print("KERNEL_OK")
</pallas_src>

<mosaic_0001>
module attributes {stable_mosaic.version = 11 : i64} {
  func.func @kernel(%arg0: i32, %arg1: i32, %arg2: memref<16x128xf32, #tpu.memory_space<vmem>>, %arg3: memref<16x128xf32, #tpu.memory_space<vmem>>, %arg4: memref<1x1x128xf32, #tpu.memory_space<vmem>>) attributes {dimension_semantics = [#tpu.dimension_semantics<parallel>, #tpu.dimension_semantics<arbitrary>], iteration_bounds = array<i64: 1, 1>, scalar_prefetch = 0 : i64, scratch_operands = 0 : i64, tpu.core_type = #tpu.core_type<tc>, window_params = [{transform_indices = @transform_0, window_bounds = array<i64: 16, 128>}, {transform_indices = @transform_1, window_bounds = array<i64: 16, 128>}, {transform_indices = @transform_2, window_bounds = array<i64: 1, 1, 128>}]} {
    %c0_i32 = arith.constant 0 : i32
    %0 = arith.cmpi eq, %arg1, %c0_i32 : i32
    %1 = arith.extui %0 : i1 to i32
    %c0_i32_0 = arith.constant 0 : i32
    %2 = arith.cmpi ne, %1, %c0_i32_0 : i32
    scf.if %2 {
      %cst_10 = arith.constant 0.000000e+00 : f32
      %13 = vector.broadcast %cst_10 : f32 to vector<1x1x128xf32>
      %c0_11 = arith.constant 0 : index
      %c0_12 = arith.constant 0 : index
      %c0_13 = arith.constant 0 : index
      %14 = vector.load %arg4[%c0_11, %c0_12, %c0_13] : memref<1x1x128xf32, #tpu.memory_space<vmem>>, vector<1x1x128xf32>
      tpu.vector_store %arg4[%c0_11, %c0_12, %c0_13], %13 {strides = array<i32>} : memref<1x1x128xf32, #tpu.memory_space<vmem>>, vector<1x1x128xf32>,
    } else {
    }
    %c0 = arith.constant 0 : index
    %c0_1 = arith.constant 0 : index
    %3 = vector.load %arg2[%c0, %c0_1] : memref<16x128xf32, #tpu.memory_space<vmem>>, vector<16x128xf32>
    %c0_2 = arith.constant 0 : index
    %c0_3 = arith.constant 0 : index
    %4 = vector.load %arg3[%c0_2, %c0_3] : memref<16x128xf32, #tpu.memory_space<vmem>>, vector<16x128xf32>
    %5 = arith.subf %3, %4 : vector<16x128xf32>
    %6 = math.absf %5 : vector<16x128xf32>
    %c0_4 = arith.constant 0 : index
    %c0_5 = arith.constant 0 : index
    %c0_6 = arith.constant 0 : index
    %7 = vector.load %arg4[%c0_4, %c0_5, %c0_6] : memref<1x1x128xf32, #tpu.memory_space<vmem>>, vector<1x1x128xf32>
    %cst = arith.constant dense<0.000000e+00> : vector<128xf32>
    %8 = vector.multi_reduction <add>, %6, %cst [0] : vector<16x128xf32> to vector<128xf32>
    %9 = vector.shape_cast %8 : vector<128xf32> to vector<1x128xf32>
    %10 = vector.shape_cast %9 : vector<1x128xf32> to vector<1x1x128xf32>
    %11 = arith.addf %7, %10 : vector<1x1x128xf32>
    %c0_7 = arith.constant 0 : index
    %c0_8 = arith.constant 0 : index
    %c0_9 = arith.constant 0 : index
    %12 = vector.load %arg4[%c0_7, %c0_8, %c0_9] : memref<1x1x128xf32, #tpu.memory_space<vmem>>, vector<1x1x128xf32>
    tpu.vector_store %arg4[%c0_7, %c0_8, %c0_9], %11 {strides = array<i32>} : memref<1x1x128xf32, #tpu.memory_space<vmem>>, vector<1x1x128xf32>,
    return
  }
  func.func @transform_0(%arg0: i32, %arg1: i32) -> (i32, i32) {
    %c1_i32 = arith.constant 1 : i32
    %0 = arith.muli %arg0, %c1_i32 : i32
    %1 = arith.addi %0, %arg1 : i32
    %c0_i32 = arith.constant 0 : i32
    %c0_i32_0 = arith.constant 0 : i32
    return %1, %c0_i32 : i32, i32
  }
  func.func @transform_1(%arg0: i32, %arg1: i32) -> (i32, i32) {
    %c1_i32 = arith.constant 1 : i32
    %0 = arith.muli %arg0, %c1_i32 : i32
    %1 = arith.addi %0, %arg1 : i32
    %c0_i32 = arith.constant 0 : i32
    %c0_i32_0 = arith.constant 0 : i32
    return %1, %c0_i32 : i32, i32
  }
  func.func @transform_2(%arg0: i32, %arg1: i32) -> (i32, i32, i32) {
    %c0_i32 = arith.constant 0 : i32
    %c0_i32_0 = arith.constant 0 : i32
    %c0_i32_1 = arith.constant 0 : i32
    return %arg0, %c0_i32, %c0_i32_0 : i32, i32, i32
  }
}

</mosaic_0001>

<bundles_post_ra>
// kernel: _l1_sum.1
= control target key start
LH: loop header
LB: loop body
LE: loop exit
PB: predicated region body
PF: predicated region fallthrough
CT: control target
= control target key end

     0   :  { %v95_v0 = vmov 0.0   ;;  %s132_s2 = inlined_call_operand.vmem [shape: f32[1,1,128], index: 2, kind: output, shape index: {}]   ;;  %s133_s0 = inlined_call_operand.vmem [shape: f32[16,128], index: 0, kind: input, shape index: {}]   ;;  %s134_s1 = inlined_call_operand.vmem [shape: f32[16,128], index: 1, kind: input, shape index: {}]  }
   0x1   :  { %59 = vst [vmem:[%s132_s2] sm:$0x1] %v95_v0  ;;  %v60_v1 = vld [vmem:[%s133_s0] sm:$0xff]  ;;  %v61_v2 = vld [vmem:[%s133_s0 + $0x8] sm:$0xff] }
   0x2   :  { %v62_v3 = vld [vmem:[%s134_s1] sm:$0xff]  ;;  %v63_v4 = vld [vmem:[%s134_s1 + $0x8] sm:$0xff] }
   0x3   :  { %v64_v5 = vsub.f32 %v60_v1, %v62_v3  ;;  %v65_v6 = vsub.f32 %v61_v2, %v63_v4 }
   0x5   :  { %v66_v7 = vand.u32 2147483647, %v64_v5  ;;  %v67_v8 = vand.u32 2147483647, %v65_v6 }
   0x7   :  { %v69_v9 = vadd.f32 %v67_v8, %v66_v7 }
   0x8   :  { %v68_v15 = vld [vmem:[%s132_s2] sm:$0x1] }
   0x9   :  { %v70_v10 = vrot.slane %v69_v9, 4 }
   0xb   :  { %v71_v11 = vadd.f32 %v70_v10, %v69_v9 }
   0xd   :  { %v72_v12 = vrot.slane %v71_v11, 2 }
   0xf   :  { %v73_v13 = vadd.f32 %v72_v12, %v71_v11 }
  0x11   :  { %v74_v14 = vrot.slane %v73_v13, 1 }
  0x13   :  { %v75_v16 = vadd.f32 %v74_v14, %v73_v13 }
  0x15   :  { %v76_v17 = vadd.f32 %v75_v16, %v68_v15 }
  0x17   :  { %77 = vst [vmem:[%s132_s2] sm:$0x1] %v76_v17 }

</bundles_post_ra>
